<compile_context>
chip_gen: v6e
topology: v6e:2x2x1
jax: 0.10.0
libtpu: 0.0.40
codegen_flags: <defaults>
</compile_context>

<pallas_src>
import jax
import jax.numpy as jnp
from jax.experimental import pallas as pl
from jax.experimental.pallas import tpu as pltpu


def _round_up(v: int, m: int) -> int:
    return ((v + m - 1) // m) * m


def _mlp_policy_kernel(x_ref, w1_ref, w2_ref, o_ref):
    """Fused Linear -> ReLU -> Linear -> Tanh on one batch tile.

    x_ref  : [tm, dim_x]    f32 (unpadded feature dim)
    w1_ref : [dim_x, dh]    f32, resident across grid steps (dh = dim_h padded to 128)
    w2_ref : [dh, dim_y]    f32, resident across grid steps (unpadded output dim)
    o_ref  : [tm, dim_y]    f32 (unpadded)
    """
    # Layer 0: x @ W1 on the MXU with f32 accumulation, ReLU in f32.
    h = jnp.dot(x_ref[...], w1_ref[...], preferred_element_type=jnp.float32)
    h = jnp.maximum(h, 0.0)
    # Output layer: f32 MXU matmul straight to the unpadded action dim.
    y = jnp.dot(h, w2_ref[...], preferred_element_type=jnp.float32)
    # Tanh on the f32 accumulator (EUP slot), then the narrow (masked) store.
    o_ref[...] = jnp.tanh(y).astype(o_ref.dtype)


def prepare_policy_weights(w1, w2):
    """One-time per-policy weight prep (do NOT call per forward step).

    w1 : [dim_h, dim_x]  PyTorch nn.Linear layout (out, in)
    w2 : [dim_y, dim_h]  PyTorch nn.Linear layout (out, in)

    Returns (w1_p, w2_p) with:
      w1_p : [dim_x, dh]   f32, (in, out) layout, hidden dim zero-padded to 128
      w2_p : [dh, dim_y]   f32, (in, out) layout, hidden dim zero-padded to 128

    Zero padding of the hidden dim is exact: the extra h columns are
    ReLU(x @ 0) = 0 and multiply zero rows of w2_p.
    """
    dim_h, dim_x = w1.shape
    dim_y, dim_h2 = w2.shape
    assert dim_h2 == dim_h
    dh = _round_up(dim_h, 128)
    w1_t = jnp.asarray(w1, jnp.float32).T  # [dim_x, dim_h]
    w2_t = jnp.asarray(w2, jnp.float32).T  # [dim_h, dim_y]
    w1_p = jnp.zeros((dim_x, dh), jnp.float32).at[:, :dim_h].set(w1_t)
    w2_p = jnp.zeros((dh, dim_y), jnp.float32).at[:dim_h, :].set(w2_t)
    return w1_p, w2_p


def _pick_tm(B: int) -> int:
    """Batch tile size.

    * B < 64     : one full-array block (block dim == array dim is exempt from
                   the 8-sublane rule); splitting would just add ~0.35us/step
                   overhead on a near-trivial kernel.
    * 64<=B<1024 : split into ~2 tiles (multiple of 8 rows) so the "parallel"
                   grid has >= 2 steps and both v7x TensorCores get work.
    * B >= 1024  : 512-row tiles (big, efficient DMAs; grid >= 2).
    """
    if B < 64:
        return max(B, 1)
    if B >= 1024:
        return 512
    return max(8, _round_up(pl.cdiv(B, 2), 8))


@jax.jit
def mlp_policy_forward(x, w1_p, w2_p):
    """Forward pass of MLPPolicy (non-discrete, no bias, single hidden layer).

    x    : [B, dim_x] or [dim_x]   (any float dtype; cast to f32 like PyTorch)
    w1_p : [dim_x, dh]   from prepare_policy_weights
    w2_p : [dh, dim_y]   from prepare_policy_weights
    returns: [B, dim_y] float32  (exactly, no padding)
    """
    x = jnp.asarray(x, jnp.float32)
    if x.ndim == 1:
        x = x[None, :]
    B, dim_x = x.shape
    dim_x_w, dh = w1_p.shape
    dh2, dim_y = w2_p.shape
    assert dim_x_w == dim_x and dh2 == dh

    tm = _pick_tm(B)
    grid = (pl.cdiv(B, tm),)

    # Edge batch blocks (B not a multiple of tm) are handled by Pallas: the
    # out-of-bounds rows read from x are garbage but only affect output rows
    # that are never written back (output DMA is clipped to [B, dim_y]).
    return pl.pallas_call(
        _mlp_policy_kernel,
        out_shape=jax.ShapeDtypeStruct((B, dim_y), jnp.float32),
        grid_spec=pltpu.PrefetchScalarGridSpec(
            num_scalar_prefetch=0,
            grid=grid,
            in_specs=[
                # x: tiled over batch only; full-extent (unpadded) feature dim.
                pl.BlockSpec((tm, dim_x), lambda i: (i, 0)),
                # Weights: whole array, constant index map -> VMEM-resident.
                pl.BlockSpec((dim_x, dh), lambda i: (0, 0)),
                pl.BlockSpec((dh, dim_y), lambda i: (0, 0)),
            ],
            # Output: unpadded [tm, dim_y] blocks; no post-kernel slice needed.
            out_specs=pl.BlockSpec((tm, dim_y), lambda i: (i, 0)),
        ),
        compiler_params=pltpu.CompilerParams(
            dimension_semantics=("parallel",),
        ),
    )(x, w1_p, w2_p)


def _mlp_policy_reference(x, w1, w2):
    """Pure-JAX f32 reference matching the PyTorch module."""
    x = jnp.asarray(x, jnp.float32)
    if x.ndim == 1:
        x = x[None, :]
    h = jnp.maximum(x @ jnp.asarray(w1, jnp.float32).T, 0.0)
    return jnp.tanh(h @ jnp.asarray(w2, jnp.float32).T)


# TODO(synk): multi-hidden-layer configs (dim_h given as a list) and the
# discrete=True head (no tanh; argmax lives in get_action) are not wired up
# here; the default single-hidden-layer, non-discrete forward is implemented.


if __name__ == "__main__":
    # Small deterministic example consistent with an MLP policy:
    # batch=2 observations of dim 16 -> hidden 32 -> 4 actions.
    batch, dim_x, dim_h, dim_y = 2, 16, 32, 4

    key = jax.random.PRNGKey(0)
    kx, k1, k2 = jax.random.split(key, 3)
    x = jax.random.normal(kx, (batch, dim_x), dtype=jnp.float32)
    # PyTorch nn.Linear weight layout: (out_features, in_features).
    w1 = 0.1 * jax.random.normal(k1, (dim_h, dim_x), dtype=jnp.float32)
    w2 = 0.1 * jax.random.normal(k2, (dim_y, dim_h), dtype=jnp.float32)

    # One-time weight prep (amortized across all rollout steps).
    w1_p, w2_p = prepare_policy_weights(w1, w2)

    y = mlp_policy_forward(x, w1_p, w2_p)
    y = jax.block_until_ready(y)

    y_ref = _mlp_policy_reference(x, w1, w2)
    assert y.shape == (batch, dim_y)
    assert jnp.allclose(y, y_ref, atol=1e-2, rtol=1e-2)

    print("KERNEL_OK")
</pallas_src>

<mosaic_0001>
module attributes {stable_mosaic.version = 11 : i64} {
  func.func @_mlp_policy_kernel(%arg0: i32, %arg1: memref<2x16xf32, #tpu.memory_space<vmem>>, %arg2: memref<16x128xf32, #tpu.memory_space<vmem>>, %arg3: memref<128x4xf32, #tpu.memory_space<vmem>>, %arg4: memref<2x4xf32, #tpu.memory_space<vmem>>) attributes {dimension_semantics = [#tpu.dimension_semantics<parallel>], iteration_bounds = array<i64: 1>, scalar_prefetch = 0 : i64, scratch_operands = 0 : i64, tpu.core_type = #tpu.core_type<tc>, window_params = [{transform_indices = @transform_0, window_bounds = array<i64: 2, 16>}, {pipeline_mode = #tpu.pipeline_mode<synchronous>, transform_indices = @transform_1, window_bounds = array<i64: 16, 128>}, {pipeline_mode = #tpu.pipeline_mode<synchronous>, transform_indices = @transform_2, window_bounds = array<i64: 128, 4>}, {transform_indices = @transform_3, window_bounds = array<i64: 2, 4>}]} {
    %c0 = arith.constant 0 : index
    %c0_0 = arith.constant 0 : index
    %0 = vector.load %arg1[%c0, %c0_0] : memref<2x16xf32, #tpu.memory_space<vmem>>, vector<2x16xf32>
    %c0_1 = arith.constant 0 : index
    %c0_2 = arith.constant 0 : index
    %1 = vector.load %arg2[%c0_1, %c0_2] : memref<16x128xf32, #tpu.memory_space<vmem>>, vector<16x128xf32>
    %cst = arith.constant dense<0.000000e+00> : vector<2x128xf32>
    %2 = tpu.matmul %0, %1, %cst {dimension_numbers = #tpu.dot_dimension_numbers<[1], [0], [0], [1], [0, 0, 1, 1], [], []>} : vector<2x16xf32>, vector<16x128xf32>, vector<2x128xf32> -> vector<2x128xf32>
    %cst_3 = arith.constant 0.000000e+00 : f32
    %3 = vector.broadcast %cst_3 : f32 to vector<2x128xf32>
    %4 = arith.maximumf %2, %3 : vector<2x128xf32>
    %c0_4 = arith.constant 0 : index
    %c0_5 = arith.constant 0 : index
    %5 = vector.load %arg3[%c0_4, %c0_5] : memref<128x4xf32, #tpu.memory_space<vmem>>, vector<128x4xf32>
    %cst_6 = arith.constant dense<0.000000e+00> : vector<2x4xf32>
    %6 = tpu.matmul %4, %5, %cst_6 {dimension_numbers = #tpu.dot_dimension_numbers<[1], [0], [0], [1], [0, 0, 1, 1], [], []>} : vector<2x128xf32>, vector<128x4xf32>, vector<2x4xf32> -> vector<2x4xf32>
    %7 = math.tanh %6 : vector<2x4xf32>
    %c0_7 = arith.constant 0 : index
    %c0_8 = arith.constant 0 : index
    %8 = vector.load %arg4[%c0_7, %c0_8] : memref<2x4xf32, #tpu.memory_space<vmem>>, vector<2x4xf32>
    tpu.vector_store %arg4[%c0_7, %c0_8], %7 {strides = array<i32>} : memref<2x4xf32, #tpu.memory_space<vmem>>, vector<2x4xf32>,
    return
  }
  func.func @transform_0(%arg0: i32) -> (i32, i32) {
    %c0_i32 = arith.constant 0 : i32
    %c0_i32_0 = arith.constant 0 : i32
    return %arg0, %c0_i32 : i32, i32
  }
  func.func @transform_1(%arg0: i32) -> (i32, i32) {
    %c0_i32 = arith.constant 0 : i32
    %c0_i32_0 = arith.constant 0 : i32
    %c0_i32_1 = arith.constant 0 : i32
    return %c0_i32, %c0_i32_0 : i32, i32
  }
  func.func @transform_2(%arg0: i32) -> (i32, i32) {
    %c0_i32 = arith.constant 0 : i32
    %c0_i32_0 = arith.constant 0 : i32
    %c0_i32_1 = arith.constant 0 : i32
    return %c0_i32, %c0_i32_0 : i32, i32
  }
  func.func @transform_3(%arg0: i32) -> (i32, i32) {
    %c0_i32 = arith.constant 0 : i32
    %c0_i32_0 = arith.constant 0 : i32
    return %arg0, %c0_i32 : i32, i32
  }
}

</mosaic_0001>

<bundles_post_ra>
// kernel: mlp_policy_forward.1
= control target key start
LH: loop header
LB: loop body
LE: loop exit
PB: predicated region body
PF: predicated region fallthrough
CT: control target
= control target key end

     0   :  { %v286_v1 = vmov 0.0   ;;  %vm287_vm0 = vmmov 0   ;;  %vm18_vm1 = vcmask 130048   ;;  %s371_s0 = inlined_call_operand.vmem [shape: f32[2,16], index: 0, kind: input, shape index: {}]   ;;  %s372_s1 = inlined_call_operand.vmem [shape: f32[16,128], index: 1, kind: input, shape index: {}]   ;;  %s373_s2 = inlined_call_operand.vmem [shape: f32[128,4], index: 2, kind: input, shape index: {}]   ;;  %s374_s3 = inlined_call_operand.hbm [shape: f32[2,4], index: 3, kind: output, shape index: {}]  }
   0x1   :  { %v17_v0 = vld [vmem:[%s372_s1 + $0x8] sm:$0xff]  ;;  %217 = vmatprep.subr.mxu0 %v286_v1  ;;  %v16_v2 = vld [vmem:[%s372_s1] sm:$0xff]  ;;  %221 = vmatprep.mubr.msk.f32.mxu0 %vm287_vm0, %v286_v1  ;;  %v108_v3 = vld [vmem:[%s373_s2 + $0x78] sm:$0xff] }
   0x2   :  { %218 = vmatpush3.msra.mxu0 %v17_v0  ;;  %v15_v4 = vld [vmem:[%s371_s0] sm:$0x3]  ;;  %224 = vmatprep.subr.mxu1 %v286_v1  ;;  %v107_v5 = vld [vmem:[%s373_s2 + $0x70] sm:$0xff]  ;;  %v106_v6 = vld [vmem:[%s373_s2 + $0x68] sm:$0xff] }
   0x3   :  { %219 = vmatprep.subr.mxu0 %v286_v1  ;;  %225 = vmatpush3.msra.mxu1 %v108_v3 }
   0x4   :  { %220 = vmatpush3.msra.mxu0 %v16_v2  ;;  %226 = vmatprep.subr.mxu1 %v286_v1 }
   0x5   :  { %222 = vmatmul.mubr.msk.f32.vlgmr.msra.gmra.mxu0 %vm18_vm1, %v15_v4  ;;  %227 = vmatpush3.msra.mxu1 %v107_v5 }
   0x6   :  { %8 = vsyncpa [#allocation3], 0  ;;  %228 = vmatprep.subr.mxu1 %v286_v1  ;;  %v105_v7 = vld [vmem:[%s373_s2 + $0x60] sm:$0xff]  ;;  %256 = vmatprep.mubr.msk.f32.mxu1 %vm287_vm0, %v286_v1  ;;  %v104_v8 = vld [vmem:[%s373_s2 + $0x58] sm:$0xff]  ;;  %s288_s21 = smov [#allocation2]   ;;  %vm180_vm2 = vcmask 25600  }
   0x7   :  { %229 = vmatpush3.msra.mxu1 %v106_v6  ;;  %v103_v9 = vld [vmem:[%s373_s2 + $0x50] sm:$0xff]  ;;  %v102_v10 = vld [vmem:[%s373_s2 + $0x48] sm:$0xff]  ;;  %v101_v11 = vld [vmem:[%s373_s2 + $0x40] sm:$0xff]  ;;  %s188_s1 = sshll.u32 %s288_s21, 4  ;;  %s189_s1 = int_to_ptr.vmem [resolvable:$true] %s188_s1 }
   0x8   :  { %230 = vmatprep.subr.mxu1 %v286_v1  ;;  %v100_v12 = vld [vmem:[%s373_s2 + $0x38] sm:$0xff]  ;;  %v99_v13 = vld [vmem:[%s373_s2 + $0x30] sm:$0xff]  ;;  %v98_v14 = vld [vmem:[%s373_s2 + $0x28] sm:$0xff]  ;;  %s264_s22 = scalar_lea.vmem %s189_s1, 32  ;;  %p269_p1 = scmp.lt.s32.totalorder %s189_s1, %s189_s1 }
   0x9   :  { %231 = vmatpush3.msra.mxu1 %v105_v7  ;;  %v97_v15 = vld [vmem:[%s373_s2 + $0x20] sm:$0xff]  ;;  %v96_v16 = vld [vmem:[%s373_s2 + $0x18] sm:$0xff]  ;;  %v95_v17 = vld [vmem:[%s373_s2 + $0x10] sm:$0xff]  ;;  %p265_p0 = scmp.ne.s32.totalorder %s189_s1, %s264_s22  ;;  %p270_p2 = scmp.lt.s32.totalorder %s264_s22, %s264_s22 }
   0xa   :  { %232 = vmatprep.subr.mxu1 %v286_v1  ;;  %v94_v18 = vld [vmem:[%s373_s2 + $0x8] sm:$0xff]  ;;  %v93_v19 = vld [vmem:[%s373_s2] sm:$0xff] }
   0xb   :  { %233 = vmatpush3.msra.mxu1 %v104_v8  ;;  %p271_p3 = por %p270_p2, %p269_p1 }
   0xc   :  { %234 = vmatprep.subr.mxu1 %v286_v1 }
   0xd   :  { %235 = vmatpush3.msra.mxu1 %v103_v9  ;;  %p272_p4 = pnand %p271_p3, %p265_p0 }
   0xe   :  { %236 = vmatprep.subr.mxu1 %v286_v1 }
   0xf   :  { %237 = vmatpush3.msra.mxu1 %v102_v10 }
  0x10   :  { %238 = vmatprep.subr.mxu1 %v286_v1 }
  0x11   :  { %239 = vmatpush3.msra.mxu1 %v101_v11 }
  0x12   :  { %240 = vmatprep.subr.mxu1 %v286_v1 }
  0x13   :  { %241 = vmatpush3.msra.mxu1 %v100_v12 }
  0x14   :  { %242 = vmatprep.subr.mxu1 %v286_v1 }
  0x15   :  { %243 = vmatpush3.msra.mxu1 %v99_v13 }
  0x16   :  { %244 = vmatprep.subr.mxu1 %v286_v1 }
  0x17   :  { %245 = vmatpush3.msra.mxu1 %v98_v14 }
  0x18   :  { %246 = vmatprep.subr.mxu1 %v286_v1 }
  0x19   :  { %247 = vmatpush3.msra.mxu1 %v97_v15 }
  0x1a   :  { %248 = vmatprep.subr.mxu1 %v286_v1 }
  0x1b   :  { %249 = vmatpush3.msra.mxu1 %v96_v16 }
  0x1c   :  { %250 = vmatprep.subr.mxu1 %v286_v1 }
  0x1d   :  { %251 = vmatpush3.msra.mxu1 %v95_v17 }
  0x1e   :  { %252 = vmatprep.subr.mxu1 %v286_v1 }
  0x1f   :  { %253 = vmatpush3.msra.mxu1 %v94_v18 }
  0x20   :  { %254 = vmatprep.subr.mxu1 %v286_v1 }
  0x21   :  { %255 = vmatpush3.msra.mxu1 %v93_v19 }
  0xc5   :  { %v88_v20 = vpop.f32.mrf.mxu0 }
  0xc6   :  { %v92_v21 = vmax.f32 %v88_v20, 0.0 }
  0xc7   :  { %v223_v22 = vpop.f32.mrf.mxu0 }
  0xc8   :  { %257 = vmatmul.mubr.f32.vlgmr.msra.gmra.mxu1 %v92_v21 }
 0x188   :  { %v175_v23 = vpop.f32.mrf.mxu1 }
 0x189   :  { %262 = vtanh.f32 %v175_v23 }
 0x18a   :  { %v258_v24 = vpop.f32.mrf.mxu1 }
 0x196   :  { %v263_v25 = vpop.eup %262 }
 0x197   :  { %181 = vst.msk [vmem:[#allocation2] sm:$0x3] %vm180_vm2, %v263_v25 }
 0x198   :  { %275 = shalt.err (!%p272_p4)
}
 0x199   :  { %191 = dma.vmem_to_hbm [thread:$0]  %s189_s1, 32, %s374_s3, [#allocation3]  }
 0x19a   :  { %284 = dma.done.wait [#allocation3], 32  }
 0x19b   :  { %285 = vsyncadd [#allocation3], 4294967264 }
 0x19c   :  { %195 = vsyncpa [#allocation3], 1 }

</bundles_post_ra>
